<compile_context>
chip_gen: v7x
topology: tpu7x:2x2x1
jax: 0.10.0
libtpu: 0.0.40
codegen_flags: <defaults>
</compile_context>

<pallas_src>
import jax
import jax.numpy as jnp
from jax.experimental import pallas as pl
from jax.experimental.pallas import tpu as pltpu


def _channel_mix_kernel(x_ref, xx_ref, mk_ref, mr_ref, wk_ref, wr_ref, wv_ref, o_ref):
    # x_ref / xx_ref: (T, C) token tile of x and its shifted counterpart
    # mk_ref / mr_ref: (1, C) spatial-mix vectors (VMEM-resident)
    # wk_ref: (C, Hh)  key weight, pre-transposed (VMEM-resident)
    # wr_ref: (C, C)   receptance weight, pre-transposed (VMEM-resident)
    # wv_ref: (Hh, C)  value weight, pre-transposed (VMEM-resident)
    x = x_ref[...]
    xx = xx_ref[...]
    mk = mk_ref[...]          # read once per tile; broadcast over sublanes
    mr = mr_ref[...]

    xk = x * mk + xx * (1.0 - mk)
    xr = x * mr + xx * (1.0 - mr)

    k = jnp.dot(xk, wk_ref[...], preferred_element_type=jnp.float32)    # (T, Hh)
    k = jnp.square(jnp.maximum(k, 0.0)).astype(wv_ref.dtype)
    kv = jnp.dot(k, wv_ref[...], preferred_element_type=jnp.float32)    # (T, C)
    r = jnp.dot(xr, wr_ref[...], preferred_element_type=jnp.float32)    # (T, C)

    o_ref[...] = (jax.nn.sigmoid(r) * kv).astype(o_ref.dtype)


def q_shift(x, shift_pixel, gamma, patch_resolution):
    """VRWKV q_shift in (B, H, W, C) layout: shift channel quarters by
    `shift_pixel` in the 4 spatial directions, zero-filled at the boundary."""
    B, N, C = x.shape
    H, W = patch_resolution
    s = shift_pixel
    g = int(C * gamma)
    xi = x.reshape(B, H, W, C)
    pieces = [
        # group 0: shift right along W
        jnp.pad(xi[:, :, :W - s, 0 * g:1 * g], ((0, 0), (0, 0), (s, 0), (0, 0))),
        # group 1: shift left along W
        jnp.pad(xi[:, :, s:, 1 * g:2 * g], ((0, 0), (0, 0), (0, s), (0, 0))),
        # group 2: shift down along H
        jnp.pad(xi[:, :H - s, :, 2 * g:3 * g], ((0, 0), (s, 0), (0, 0), (0, 0))),
        # group 3: shift up along H
        jnp.pad(xi[:, s:, :, 3 * g:4 * g], ((0, 0), (0, s), (0, 0), (0, 0))),
    ]
    if 4 * g < C:
        pieces.append(xi[..., 4 * g:])
    return jnp.concatenate(pieces, axis=-1).reshape(B, N, C)


def vrwkv_channel_mix(x, mix_k, mix_r, key_w, recept_w, value_w,
                      patch_resolution, shift_pixel=1, channel_gamma=0.25,
                      token_tile=512):
    """x: (B, N, C); key_w: (Hh, C); recept_w: (C, C); value_w: (C, Hh) (torch layout)."""
    B, N, C = x.shape
    Hh = key_w.shape[0]
    dt = x.dtype

    if shift_pixel > 0:
        xx = q_shift(x, shift_pixel, channel_gamma, patch_resolution)
    else:
        xx = x

    total = B * N
    T = min(token_tile, total)
    pad = (-total) % T
    x_flat = x.reshape(total, C)
    xx_flat = xx.reshape(total, C)
    if pad:
        x_flat = jnp.pad(x_flat, ((0, pad), (0, 0)))
        xx_flat = jnp.pad(xx_flat, ((0, pad), (0, 0)))
    tp = total + pad

    # Pre-transpose weights so the kernel does (T, in) @ (in, out) directly,
    # and keep params in the activation dtype for the fast MXU path.
    wk = key_w.T.astype(dt)            # (C, Hh)
    wr = recept_w.T.astype(dt)         # (C, C)
    wv = value_w.T.astype(dt)          # (Hh, C)
    mk = mix_k.reshape(1, C).astype(dt)
    mr = mix_r.reshape(1, C).astype(dt)

    # Scoped-VMEM estimate: resident weights (double-buffered) + streamed tiles
    # + in-kernel f32 intermediates.  Raise the limit only when needed.
    itemsize = jnp.dtype(dt).itemsize
    weight_bytes = (2 * C * Hh + C * C) * itemsize
    act_bytes = 2 * (3 * T * C + 2 * C) * itemsize
    scratch_bytes = (T * Hh + 2 * T * C) * 4
    vmem_est = 2 * weight_bytes + act_bytes + scratch_bytes
    cp_kwargs = dict(dimension_semantics=("parallel",))
    if vmem_est > 32 * 1024 * 1024:
        cp_kwargs["vmem_limit_bytes"] = int(min(vmem_est * 5 // 4, 128 * 1024 * 1024))

    out_flat = pl.pallas_call(
        _channel_mix_kernel,
        out_shape=jax.ShapeDtypeStruct((tp, C), dt),
        grid_spec=pltpu.PrefetchScalarGridSpec(
            num_scalar_prefetch=0,
            grid=(tp // T,),
            in_specs=[
                pl.BlockSpec((T, C), lambda t: (t, 0)),     # x tile
                pl.BlockSpec((T, C), lambda t: (t, 0)),     # xx tile
                pl.BlockSpec((1, C), lambda t: (0, 0)),     # mix_k (resident)
                pl.BlockSpec((1, C), lambda t: (0, 0)),     # mix_r (resident)
                pl.BlockSpec((C, Hh), lambda t: (0, 0)),    # Wk^T (resident)
                pl.BlockSpec((C, C), lambda t: (0, 0)),     # Wr^T (resident)
                pl.BlockSpec((Hh, C), lambda t: (0, 0)),    # Wv^T (resident)
            ],
            out_specs=pl.BlockSpec((T, C), lambda t: (t, 0)),
        ),
        compiler_params=pltpu.CompilerParams(**cp_kwargs),
    )(x_flat, xx_flat, mk, mr, wk, wr, wv)

    return out_flat[:total].reshape(B, N, C)


def vrwkv_channel_mix_ref(x, mix_k, mix_r, key_w, recept_w, value_w,
                          patch_resolution, shift_pixel=1, channel_gamma=0.25):
    """Pure-JAX reference matching the PyTorch VRWKV_ChannelMix forward."""
    if shift_pixel > 0:
        xx = q_shift(x, shift_pixel, channel_gamma, patch_resolution)
        xk = x * mix_k + xx * (1.0 - mix_k)
        xr = x * mix_r + xx * (1.0 - mix_r)
    else:
        xk, xr = x, x
    k = jnp.square(jnp.maximum(xk @ key_w.T, 0.0))
    kv = k @ value_w.T
    return jax.nn.sigmoid(xr @ recept_w.T) * kv


if __name__ == "__main__":
    # Small shapes consistent with the module: n_embd=32, hidden_rate=4,
    # patch grid 8x8 -> 64 tokens, batch 2.
    B, C = 2, 32
    H, W = 8, 8
    N = H * W
    hidden_rate = 4
    Hh = hidden_rate * C
    n_layer, layer_id = 12, 0

    key = jax.random.PRNGKey(0)
    kx, kk, kr, kv = jax.random.split(key, 4)
    x = jax.random.normal(kx, (B, N, C), dtype=jnp.float32)

    # 'fancy' init of spatial mix params (layer_id=0 -> ratio_1_to_almost0 = 1.0).
    ratio = 1.0 - layer_id / n_layer
    base = (jnp.arange(C, dtype=jnp.float32) / C).reshape(1, 1, C)
    mix_k = jnp.power(base, ratio)
    mix_r = jnp.power(base, ratio)

    # nn.Linear weights in torch layout (out_features, in_features), no bias.
    key_w = jax.random.normal(kk, (Hh, C), dtype=jnp.float32) * 0.05
    recept_w = jax.random.normal(kr, (C, C), dtype=jnp.float32) * 0.05
    value_w = jax.random.normal(kv, (C, Hh), dtype=jnp.float32) * 0.05

    out = vrwkv_channel_mix(x, mix_k, mix_r, key_w, recept_w, value_w,
                            patch_resolution=(H, W), shift_pixel=1,
                            channel_gamma=0.25)
    out = jax.block_until_ready(out)

    ref = vrwkv_channel_mix_ref(x, mix_k, mix_r, key_w, recept_w, value_w,
                                patch_resolution=(H, W), shift_pixel=1,
                                channel_gamma=0.25)
    assert out.shape == (B, N, C)
    assert jnp.allclose(out, ref, atol=1e-5, rtol=1e-5), "mismatch vs JAX reference"

    print("KERNEL_OK")
</pallas_src>

<mosaic_0001>
module attributes {stable_mosaic.version = 11 : i64} {
  func.func @_channel_mix_kernel(%arg0: i32, %arg1: memref<128x32xf32, #tpu.memory_space<vmem>>, %arg2: memref<128x32xf32, #tpu.memory_space<vmem>>, %arg3: memref<1x32xf32, #tpu.memory_space<vmem>>, %arg4: memref<1x32xf32, #tpu.memory_space<vmem>>, %arg5: memref<32x128xf32, #tpu.memory_space<vmem>>, %arg6: memref<32x32xf32, #tpu.memory_space<vmem>>, %arg7: memref<128x32xf32, #tpu.memory_space<vmem>>, %arg8: memref<128x32xf32, #tpu.memory_space<vmem>>) attributes {dimension_semantics = [#tpu.dimension_semantics<parallel>], iteration_bounds = array<i64: 1>, scalar_prefetch = 0 : i64, scratch_operands = 0 : i64, tpu.core_type = #tpu.core_type<tc>, window_params = [{transform_indices = @transform_0, window_bounds = array<i64: 128, 32>}, {transform_indices = @transform_1, window_bounds = array<i64: 128, 32>}, {pipeline_mode = #tpu.pipeline_mode<synchronous>, transform_indices = @transform_2, window_bounds = array<i64: 1, 32>}, {pipeline_mode = #tpu.pipeline_mode<synchronous>, transform_indices = @transform_3, window_bounds = array<i64: 1, 32>}, {pipeline_mode = #tpu.pipeline_mode<synchronous>, transform_indices = @transform_4, window_bounds = array<i64: 32, 128>}, {pipeline_mode = #tpu.pipeline_mode<synchronous>, transform_indices = @transform_5, window_bounds = array<i64: 32, 32>}, {pipeline_mode = #tpu.pipeline_mode<synchronous>, transform_indices = @transform_6, window_bounds = array<i64: 128, 32>}, {transform_indices = @transform_7, window_bounds = array<i64: 128, 32>}]} {
    %c0 = arith.constant 0 : index
    %c0_0 = arith.constant 0 : index
    %0 = vector.load %arg1[%c0, %c0_0] : memref<128x32xf32, #tpu.memory_space<vmem>>, vector<128x32xf32>
    %c0_1 = arith.constant 0 : index
    %c0_2 = arith.constant 0 : index
    %1 = vector.load %arg2[%c0_1, %c0_2] : memref<128x32xf32, #tpu.memory_space<vmem>>, vector<128x32xf32>
    %c0_3 = arith.constant 0 : index
    %c0_4 = arith.constant 0 : index
    %2 = vector.load %arg3[%c0_3, %c0_4] : memref<1x32xf32, #tpu.memory_space<vmem>>, vector<1x32xf32>
    %c0_5 = arith.constant 0 : index
    %c0_6 = arith.constant 0 : index
    %3 = vector.load %arg4[%c0_5, %c0_6] : memref<1x32xf32, #tpu.memory_space<vmem>>, vector<1x32xf32>
    %4 = vector.broadcast %2 : vector<1x32xf32> to vector<128x32xf32>
    %5 = arith.mulf %0, %4 : vector<128x32xf32>
    %cst = arith.constant 1.000000e+00 : f32
    %6 = vector.broadcast %cst : f32 to vector<1x32xf32>
    %7 = arith.subf %6, %2 : vector<1x32xf32>
    %8 = vector.broadcast %7 : vector<1x32xf32> to vector<128x32xf32>
    %9 = arith.mulf %1, %8 : vector<128x32xf32>
    %10 = arith.addf %5, %9 : vector<128x32xf32>
    %11 = vector.broadcast %3 : vector<1x32xf32> to vector<128x32xf32>
    %12 = arith.mulf %0, %11 : vector<128x32xf32>
    %cst_7 = arith.constant 1.000000e+00 : f32
    %13 = vector.broadcast %cst_7 : f32 to vector<1x32xf32>
    %14 = arith.subf %13, %3 : vector<1x32xf32>
    %15 = vector.broadcast %14 : vector<1x32xf32> to vector<128x32xf32>
    %16 = arith.mulf %1, %15 : vector<128x32xf32>
    %17 = arith.addf %12, %16 : vector<128x32xf32>
    %c0_8 = arith.constant 0 : index
    %c0_9 = arith.constant 0 : index
    %18 = vector.load %arg5[%c0_8, %c0_9] : memref<32x128xf32, #tpu.memory_space<vmem>>, vector<32x128xf32>
    %cst_10 = arith.constant dense<0.000000e+00> : vector<128x128xf32>
    %19 = tpu.matmul %10, %18, %cst_10 {dimension_numbers = #tpu.dot_dimension_numbers<[1], [0], [0], [1], [0, 0, 1, 1], [], []>} : vector<128x32xf32>, vector<32x128xf32>, vector<128x128xf32> -> vector<128x128xf32>
    %cst_11 = arith.constant 0.000000e+00 : f32
    %20 = vector.broadcast %cst_11 : f32 to vector<128x128xf32>
    %21 = arith.maximumf %19, %20 : vector<128x128xf32>
    %22 = arith.mulf %21, %21 : vector<128x128xf32>
    %c0_12 = arith.constant 0 : index
    %c0_13 = arith.constant 0 : index
    %23 = vector.load %arg7[%c0_12, %c0_13] : memref<128x32xf32, #tpu.memory_space<vmem>>, vector<128x32xf32>
    %cst_14 = arith.constant dense<0.000000e+00> : vector<128x32xf32>
    %24 = tpu.matmul %22, %23, %cst_14 {dimension_numbers = #tpu.dot_dimension_numbers<[1], [0], [0], [1], [0, 0, 1, 1], [], []>} : vector<128x128xf32>, vector<128x32xf32>, vector<128x32xf32> -> vector<128x32xf32>
    %c0_15 = arith.constant 0 : index
    %c0_16 = arith.constant 0 : index
    %25 = vector.load %arg6[%c0_15, %c0_16] : memref<32x32xf32, #tpu.memory_space<vmem>>, vector<32x32xf32>
    %cst_17 = arith.constant dense<0.000000e+00> : vector<128x32xf32>
    %26 = tpu.matmul %17, %25, %cst_17 {dimension_numbers = #tpu.dot_dimension_numbers<[1], [0], [0], [1], [0, 0, 1, 1], [], []>} : vector<128x32xf32>, vector<32x32xf32>, vector<128x32xf32> -> vector<128x32xf32>
    %27 = arith.negf %26 : vector<128x32xf32>
    %28 = math.exp %27 : vector<128x32xf32>
    %cst_18 = arith.constant 1.000000e+00 : f32
    %29 = vector.broadcast %cst_18 : f32 to vector<128x32xf32>
    %30 = arith.addf %29, %28 : vector<128x32xf32>
    %31 = arith.divf %29, %30 : vector<128x32xf32>
    %32 = arith.mulf %31, %24 : vector<128x32xf32>
    %c0_19 = arith.constant 0 : index
    %c0_20 = arith.constant 0 : index
    %33 = vector.load %arg8[%c0_19, %c0_20] : memref<128x32xf32, #tpu.memory_space<vmem>>, vector<128x32xf32>
    tpu.vector_store %arg8[%c0_19, %c0_20], %32 {strides = array<i32>} : memref<128x32xf32, #tpu.memory_space<vmem>>, vector<128x32xf32>,
    return
  }
  func.func @transform_0(%arg0: i32) -> (i32, i32) {
    %c0_i32 = arith.constant 0 : i32
    %c0_i32_0 = arith.constant 0 : i32
    return %arg0, %c0_i32 : i32, i32
  }
  func.func @transform_1(%arg0: i32) -> (i32, i32) {
    %c0_i32 = arith.constant 0 : i32
    %c0_i32_0 = arith.constant 0 : i32
    return %arg0, %c0_i32 : i32, i32
  }
  func.func @transform_2(%arg0: i32) -> (i32, i32) {
    %c0_i32 = arith.constant 0 : i32
    %c0_i32_0 = arith.constant 0 : i32
    %c0_i32_1 = arith.constant 0 : i32
    return %c0_i32, %c0_i32_0 : i32, i32
  }
  func.func @transform_3(%arg0: i32) -> (i32, i32) {
    %c0_i32 = arith.constant 0 : i32
    %c0_i32_0 = arith.constant 0 : i32
    %c0_i32_1 = arith.constant 0 : i32
    return %c0_i32, %c0_i32_0 : i32, i32
  }
  func.func @transform_4(%arg0: i32) -> (i32, i32) {
    %c0_i32 = arith.constant 0 : i32
    %c0_i32_0 = arith.constant 0 : i32
    %c0_i32_1 = arith.constant 0 : i32
    return %c0_i32, %c0_i32_0 : i32, i32
  }
  func.func @transform_5(%arg0: i32) -> (i32, i32) {
    %c0_i32 = arith.constant 0 : i32
    %c0_i32_0 = arith.constant 0 : i32
    %c0_i32_1 = arith.constant 0 : i32
    return %c0_i32, %c0_i32_0 : i32, i32
  }
  func.func @transform_6(%arg0: i32) -> (i32, i32) {
    %c0_i32 = arith.constant 0 : i32
    %c0_i32_0 = arith.constant 0 : i32
    %c0_i32_1 = arith.constant 0 : i32
    return %c0_i32, %c0_i32_0 : i32, i32
  }
  func.func @transform_7(%arg0: i32) -> (i32, i32) {
    %c0_i32 = arith.constant 0 : i32
    %c0_i32_0 = arith.constant 0 : i32
    return %arg0, %c0_i32 : i32, i32
  }
}

</mosaic_0001>

<bundles_post_ra>
// kernel: tpu_custom_call.1
= control target key start
LH: loop header
LB: loop body
LE: loop exit
PB: predicated region body
PF: predicated region fallthrough
CT: control target
= control target key end

     0   :  { %v61_v0 = vlaneseq  ;;  %vm186_vm0 = vcmask 261120   ;;  %s1785_s4 = inlined_call_operand.vmem [shape: f32[32,128], index: 4, kind: input, shape index: {}]   ;;  %s1786_s2 = inlined_call_operand.vmem [shape: f32[1,32], index: 2, kind: input, shape index: {}]   ;;  %s1787_s0 = inlined_call_operand.vmem [shape: f32[128,32], index: 0, kind: input, shape index: {}]   ;;  %s1788_s1 = inlined_call_operand.vmem [shape: f32[128,32], index: 1, kind: input, shape index: {}]   ;;  %s1789_s3 = inlined_call_operand.vmem [shape: f32[1,32], index: 3, kind: input, shape index: {}]   ;;  %s1790_s5 = inlined_call_operand.vmem [shape: f32[32,32], index: 5, kind: input, shape index: {}]   ;;  %s1791_s6 = inlined_call_operand.vmem [shape: f32[128,32], index: 6, kind: input, shape index: {}]   ;;  %s1792_s7 = inlined_call_operand.vmem [shape: f32[128,32], index: 7, kind: output, shape index: {}]  }
   0x1   :  { %v182_v1 = vld [vmem:[%s1785_s4] sm:$0xff]  ;;  %v183_v2 = vld [vmem:[%s1785_s4 + $0x8] sm:$0xff]  ;;  %v184_v3 = vld [vmem:[%s1785_s4 + $0x10] sm:$0xff] }
   0x2   :  { %v1142_v4 = vpack.c.bf16 %v183_v2, %v182_v1  ;;  %v185_v5 = vld [vmem:[%s1785_s4 + $0x18] sm:$0xff]  ;;  %v62_v6 = vshrl.u32 %v61_v0, 7  ;;  %v58_v8 = vld [vmem:[%s1786_s2] sm:$0x1]  ;;  %v1334_v15 = vld [vmem:[%s1787_s0 + $0x8] sm:$0xff] }
   0x3   :  { %v1146_v7 = vpack.c.bf16 %v185_v5, %v184_v3  ;;  %v82_v10 = vsub.f32 1.0, %v58_v8  ;;  %v1318_v11 = vld [vmem:[%s1787_s0] sm:$0xff]  ;;  %v1339_v16 = vld [vmem:[%s1788_s1 + $0x8] sm:$0xff]  ;;  %v1344_v17 = vld [vmem:[%s1787_s0 + $0x10] sm:$0xff] }
   0x4   :  { %1143 = vmatprep.subr.bf16.mxu0 %v1142_v4  ;;  %v1313_v9 = vsub.s32 0, %v62_v6  ;;  %v1323_v12 = vld [vmem:[%s1788_s1] sm:$0xff]  ;;  %v1349_v18 = vld [vmem:[%s1788_s1 + $0x10] sm:$0xff]  ;;  %v1354_v19 = vld [vmem:[%s1787_s0 + $0x18] sm:$0xff] }
   0x5   :  { %1145 = vmatpush3.bf16.msra.mxu0 %v1142_v4  ;;  %v1363_v22 = vld [vmem:[%s1788_s1 + $0x18] sm:$0xff]  ;;  %v1368_v23 = vld [vmem:[%s1787_s0 + $0x20] sm:$0xff]  ;;  %v1388_v31 = vld [vmem:[%s1787_s0 + $0x28] sm:$0xff] }
   0x6   :  { %1147 = vmatprep.subr.bf16.mxu0 %v1146_v7  ;;  %v1326_v13 = vrot.slane %v58_v8, %v1313_v9  ;;  %v1329_v14 = vrot.slane %v82_v10, %v1313_v9  ;;  %v1377_v26 = vld [vmem:[%s1788_s1 + $0x20] sm:$0xff]  ;;  %v1393_v32 = vld [vmem:[%s1788_s1 + $0x28] sm:$0xff]  ;;  %v1402_v36 = vld [vmem:[%s1787_s0 + $0x30] sm:$0xff] }
   0x7   :  { %v1407_v37 = vld [vmem:[%s1788_s1 + $0x30] sm:$0xff]  ;;  %v59_v38 = vld [vmem:[%s1789_s3] sm:$0x1]  ;;  %v1423_v44 = vld [vmem:[%s1787_s0 + $0x38] sm:$0xff] }
   0x8   :  { %v66_v20 = vmul.f32 %v1326_v13, %v1318_v11  ;;  %v89_v21 = vmul.f32 %v1329_v14, %v1323_v12  ;;  %v67_v24 = vmul.f32 %v1326_v13, %v1334_v15  ;;  %v90_v25 = vmul.f32 %v1329_v14, %v1339_v16  ;;  %v1428_v45 = vld [vmem:[%s1788_s1 + $0x38] sm:$0xff]  ;;  %v1438_v50 = vld [vmem:[%s1787_s0 + $0x40] sm:$0xff]  ;;  %v1452_v54 = vld [vmem:[%s1787_s0 + $0x48] sm:$0xff] }
   0x9   :  { %1149 = vmatpush3.bf16.msra.mxu0 %v1146_v7  ;;  %v68_v28 = vmul.f32 %v1326_v13, %v1344_v17  ;;  %v91_v29 = vmul.f32 %v1329_v14, %v1349_v18  ;;  %v69_v30 = vmul.f32 %v1326_v13, %v1354_v19  ;;  %v92_v34 = vmul.f32 %v1329_v14, %v1363_v22  ;;  %v1443_v51 = vld [vmem:[%s1788_s1 + $0x40] sm:$0xff]  ;;  %v1457_v55 = vld [vmem:[%s1788_s1 + $0x48] sm:$0xff]  ;;  %v1462_v56 = vld [vmem:[%s1787_s0 + $0x50] sm:$0xff] }
   0xa   :  { %v105_v27 = vadd.f32 %v89_v21, %v66_v20  ;;  %v106_v33 = vadd.f32 %v90_v25, %v67_v24  ;;  %v70_v35 = vmul.f32 %v1326_v13, %v1368_v23  ;;  %v93_v40 = vmul.f32 %v1329_v14, %v1377_v26  ;;  %v1468_v58 = vld [vmem:[%s1788_s1 + $0x50] sm:$0xff]  ;;  %v1473_v59 = vld [vmem:[%s1787_s0 + $0x78] sm:$0xff]  ;;  %v573_v60 = vld [vmem:[%s1790_s5] sm:$0xff] }
   0xb   :  { %v107_v39 = vadd.f32 %v91_v29, %v68_v28  ;;  %v108_v41 = vadd.f32 %v92_v34, %v69_v30  ;;  %v71_v42 = vmul.f32 %v1326_v13, %v1388_v31  ;;  %v94_v43 = vmul.f32 %v1329_v14, %v1393_v32  ;;  %v574_v61 = vld [vmem:[%s1790_s5 + $0x8] sm:$0xff]  ;;  %v412_v2 = vld [vmem:[%s1791_s6] sm:$0xff]  ;;  %v575_v4 = vld [vmem:[%s1790_s5 + $0x10] sm:$0xff] }
   0xc   :  { %1030 = vmatprep.mubr.msk.f32.mxu0 %vm186_vm0, %v105_v27  ;;  %v109_v46 = vadd.f32 %v93_v40, %v70_v35  ;;  %v72_v47 = vmul.f32 %v1326_v13, %v1402_v36  ;;  %v95_v48 = vmul.f32 %v1329_v14, %v1407_v37  ;;  %v143_v49 = vsub.f32 1.0, %v59_v38  ;;  %v413_v3 = vld [vmem:[%s1791_s6 + $0x8] sm:$0xff]  ;;  %v576_v6 = vld [vmem:[%s1790_s5 + $0x18] sm:$0xff]  ;;  %v414_v7 = vld [vmem:[%s1791_s6 + $0x10] sm:$0xff] }
   0xd   :  { %1031 = vmatmul.mubr.msk.f32.vlgmr.msra.gmra.mrb[0].mxu0 %vm186_vm0, %v106_v33  ;;  %v73_v52 = vmul.f32 %v1326_v13, %v1423_v44  ;;  %v96_v53 = vmul.f32 %v1329_v14, %v1428_v45  ;;  %v110_v57 = vadd.f32 %v94_v43, %v71_v42  ;;  %v1482_v62 = vrot.slane %v59_v38, %v1313_v9  ;;  %v415_v8 = vld [vmem:[%s1791_s6 + $0x18] sm:$0xff]  ;;  %v416_v40 = vld [vmem:[%s1791_s6 + $0x20] sm:$0xff] }
   0xe   :  { %1033 = vmatprep.mubr.msk.f32.mxu0 %vm186_vm0, %v107_v39  ;;  %v111_v63 = vadd.f32 %v95_v48, %v72_v47  ;;  %v74_v0 = vmul.f32 %v1326_v13, %v1438_v50  ;;  %v97_v1 = vmul.f32 %v1329_v14, %v1443_v51  ;;  %v1499_v5 = vrot.slane %v143_v49, %v1313_v9  ;;  %v57_v21 = vld [vmem:[%s1788_s1 + $0x78] sm:$0xff]  ;;  %v1549_v42 = vld [vmem:[%s1787_s0 + $0x60] sm:$0xff] }
   0xf   :  { %v112_v10 = vadd.f32 %v96_v53, %v73_v52  ;;  %v75_v20 = vmul.f32 %v1326_v13, %v1452_v54  ;;  %v98_v9 = vmul.f32 %v1329_v14, %v1457_v55  ;;  %v142_v24 = vmul.f32 %v1482_v62, %v1473_v59  ;;  %v1525_v27 = vld [vmem:[%s1787_s0 + $0x58] sm:$0xff]  ;;  %v1554_v43 = vld [vmem:[%s1788_s1 + $0x60] sm:$0xff]  ;;  %v1568_v52 = vld [vmem:[%s1787_s0 + $0x68] sm:$0xff] }
  0x10   :  { %v76_v25 = vmul.f32 %v1326_v13, %v1462_v56  ;;  %v165_v28 = vmul.f32 %v1499_v5, %v57_v21  ;;  %v1528_v29 = vpack.c.bf16 %v574_v61, %v573_v60  ;;  %v1150_v30 = vpack.c.bf16 %v413_v3, %v412_v2  ;;  %v1536_v35 = vld [vmem:[%s1788_s1 + $0x58] sm:$0xff]  ;;  %v1590_v2 = vld [vmem:[%s1787_s0 + $0x70] sm:$0xff] }
  0x11   :  { %1034 = vmatmul.mubr.msk.f32.gmra.mrb[2].mxu0 %vm186_vm0, %v108_v41  ;;  %v113_v33 = vadd.f32 %v97_v1, %v74_v0  ;;  %v99_v34 = vmul.f32 %v1329_v14, %v1468_v58  ;;  %v1538_v38 = vpack.c.bf16 %v576_v6, %v575_v4  ;;  %v1154_v39 = vpack.c.bf16 %v415_v8, %v414_v7  ;;  %v417_v41 = vld [vmem:[%s1791_s6 + $0x28] sm:$0xff]  ;;  %v418_v0 = vld [vmem:[%s1791_s6 + $0x30] sm:$0xff]  ;;  %v419_v1 = vld [vmem:[%s1791_s6 + $0x38] sm:$0xff] }
  0x12   :  { %1036 = vmatprep.mubr.msk.f32.mxu0 %vm186_vm0, %v109_v46  ;;  %v1556_v46 = vadd.f32 %v165_v28, %v142_v24  ;;  %1183 = vmatprep.subr.bf16.mxu0 %v1528_v29  ;;  %v77_v47 = vmul.f32 %v1326_v13, %v1525_v27  ;;  %v114_v48 = vadd.f32 %v98_v9, %v75_v20  ;;  %v1595_v3 = vld [vmem:[%s1788_s1 + $0x70] sm:$0xff]  ;;  %v420_v24 = vld [vmem:[%s1791_s6 + $0x40] sm:$0xff] }
  0x13   :  { %1151 = vmatprep.subr.bf16.mxu1 %v1150_v30  ;;  %1185 = vmatpush3.bf16.msra.mxu0 %v1528_v29  ;;  %v100_v49 = vmul.f32 %v1329_v14, %v1536_v35  ;;  %v1158_v53 = vpack.c.bf16 %v417_v41, %v416_v40  ;;  %v78_v60 = vmul.f32 %v1326_v13, %v1549_v42 }
  0x14   :  { %1153 = vmatpush3.bf16.msra.mxu1 %v1150_v30  ;;  %1187 = vmatprep.subr.bf16.mxu0 %v1538_v38  ;;  %v101_v61 = vmul.f32 %v1329_v14, %v1554_v43  ;;  %v79_v4 = vmul.f32 %v1326_v13, %v1568_v52  ;;  %v1162_v8 = vpack.c.bf16 %v419_v1, %v418_v0 }
  0x15   :  { %1037 = vmatmul.mubr.msk.f32.gmra.mrb[4].mxu0 %vm186_vm0, %v110_v57  ;;  %v115_v57 = vadd.f32 %v99_v34, %v76_v25  ;;  %1155 = vmatprep.subr.bf16.mxu1 %v1154_v39  ;;  %v116_v6 = vadd.f32 %v100_v49, %v77_v47  ;;  %v80_v20 = vmul.f32 %v1326_v13, %v1590_v2  ;;  %v421_v25 = vld [vmem:[%s1791_s6 + $0x48] sm:$0xff] }
  0x16   :  { %1039 = vmatprep.mubr.msk.f32.mxu0 %vm186_vm0, %v111_v63  ;;  %v1579_v63 = vld [vmem:[%s1788_s1 + $0x68] sm:$0xff]  ;;  %v103_v9 = vmul.f32 %v1329_v14, %v1595_v3  ;;  %v81_v28 = vmul.f32 %v1326_v13, %v1473_v59  ;;  %v1166_v34 = vpack.c.bf16 %v421_v25, %v420_v24  ;;  %v150_v40 = vmul.f32 %v1499_v5, %v1323_v12  ;;  %v422_v13 = vld [vmem:[%s1791_s6 + $0x50] sm:$0xff]  ;;  %v423_v59 = vld [vmem:[%s1791_s6 + $0x58] sm:$0xff] }
  0x17   :  { %1189 = vmatpush3.bf16.msra.mxu0 %v1538_v38  ;;  %v102_v7 = vmul.f32 %v1329_v14, %v1579_v63  ;;  %v152_v49 = vmul.f32 %v1499_v5, %v1349_v18  ;;  %v154_v0 = vmul.f32 %v1499_v5, %v1377_v26  ;;  %v156_v26 = vmul.f32 %v1499_v5, %v1407_v37  ;;  %v426_v25 = vld [vmem:[%s1791_s6 + $0x70] sm:$0xff] }
  0x18   :  { %1157 = vmatpush3.bf16.msra.mxu1 %v1154_v39  ;;  %v127_v39 = vmul.f32 %v1482_v62, %v1318_v11  ;;  %v119_v41 = vadd.f32 %v103_v9, %v80_v20  ;;  %v151_v11 = vmul.f32 %v1499_v5, %v1339_v16  ;;  %v425_v16 = vld [vmem:[%s1791_s6 + $0x68] sm:$0xff] }
  0x19   :  { %1040 = vmatmul.mubr.msk.f32.gmra.mrb[6].mxu0 %vm186_vm0, %v112_v10  ;;  %1159 = vmatprep.subr.bf16.mxu1 %v1158_v53  ;;  %v117_v10 = vadd.f32 %v101_v61, %v78_v60  ;;  %v118_v30 = vadd.f32 %v102_v7, %v79_v4  ;;  %v131_v61 = vmul.f32 %v1482_v62, %v1368_v23 }
  0x1a   :  { %1042 = vmatprep.mubr.msk.f32.mxu0 %vm186_vm0, %v113_v33  ;;  %v104_v33 = vmul.f32 %v1329_v14, %v57_v21  ;;  %v128_v14 = vmul.f32 %v1482_v62, %v1334_v15  ;;  %v1170_v21 = vpack.c.bf16 %v423_v59, %v422_v13  ;;  %v166_v47 = vadd.f32 %v150_v40, %v127_v39  ;;  %v424_v15 = vld [vmem:[%s1791_s6 + $0x60] sm:$0xff] }
  0x1b   :  { %v1174_v18 = vpack.c.bf16 %v425_v16, %v424_v15  ;;  %v170_v4 = vadd.f32 %v154_v0, %v131_v61  ;;  %v133_v23 = vmul.f32 %v1482_v62, %v1402_v36  ;;  %v158_v36 = vmul.f32 %v1499_v5, %v1443_v51 }
  0x1c   :  { %1161 = vmatpush3.bf16.msra.mxu1 %v1158_v53  ;;  %v120_v12 = vadd.f32 %v104_v33, %v81_v28  ;;  %v167_v53 = vadd.f32 %v151_v11, %v128_v14  ;;  %v160_v51 = vmul.f32 %v1499_v5, %v1468_v58  ;;  %v139_v58 = vmul.f32 %v1482_v62, %v1549_v42 }
  0x1d   :  { %1043 = vmatmul.mubr.msk.f32.gmra.mrb[8].mxu0 %vm186_vm0, %v114_v48  ;;  %1163 = vmatprep.subr.bf16.mxu1 %v1162_v8  ;;  %v129_v48 = vmul.f32 %v1482_v62, %v1344_v17  ;;  %v153_v17 = vmul.f32 %v1499_v5, %v1363_v22  ;;  %v155_v22 = vmul.f32 %v1499_v5, %v1393_v32 }
  0x1e   :  { %1045 = vmatprep.mubr.msk.f32.mxu0 %vm186_vm0, %v115_v57  ;;  %v130_v57 = vmul.f32 %v1482_v62, %v1354_v19  ;;  %v132_v19 = vmul.f32 %v1482_v62, %v1388_v31  ;;  %v134_v31 = vmul.f32 %v1482_v62, %v1423_v44  ;;  %v157_v32 = vmul.f32 %v1499_v5, %v1428_v45 }
  0x1f   :  { %v168_v60 = vadd.f32 %v152_v49, %v129_v48  ;;  %v172_v7 = vadd.f32 %v156_v26, %v133_v23  ;;  %v159_v44 = vmul.f32 %v1499_v5, %v1457_v55  ;;  %v161_v55 = vmul.f32 %v1499_v5, %v1536_v35 }
  0x20   :  { %1165 = vmatpush3.bf16.msra.mxu1 %v1162_v8  ;;  %v169_v1 = vadd.f32 %v153_v17, %v130_v57  ;;  %v135_v8 = vmul.f32 %v1482_v62, %v1438_v50  ;;  %v173_v37 = vadd.f32 %v157_v32, %v134_v31  ;;  %v137_v50 = vmul.f32 %v1482_v62, %v1462_v56  ;;  %v427_v56 = vld [vmem:[%s1791_s6 + $0x78] sm:$0xff] }
  0x21   :  { %1046 = vmatmul.mubr.msk.f32.gmra.mrb[10].mxu0 %vm186_vm0, %v116_v6  ;;  %1167 = vmatprep.subr.bf16.mxu1 %v1166_v34  ;;  %v171_v6 = vadd.f32 %v155_v22, %v132_v19  ;;  %v1178_v35 = vpack.c.bf16 %v427_v56, %v426_v25  ;;  %v140_v28 = vmul.f32 %v1482_v62, %v1568_v52 }
  0x22   :  { %1048 = vmatprep.mubr.msk.f32.mxu0 %vm186_vm0, %v117_v10  ;;  %v136_v10 = vmul.f32 %v1482_v62, %v1452_v54  ;;  %v174_v45 = vadd.f32 %v158_v36, %v135_v8  ;;  %v138_v54 = vmul.f32 %v1482_v62, %v1525_v27  ;;  %v176_v9 = vadd.f32 %v160_v51, %v137_v50 }
  0x23   :  { %v162_v27 = vmul.f32 %v1499_v5, %v1554_v43 }
  0x24   :  { %1169 = vmatpush3.bf16.msra.mxu1 %v1166_v34  ;;  %v175_v20 = vadd.f32 %v159_v44, %v136_v10  ;;  %v177_v24 = vadd.f32 %v161_v55, %v138_v54 }
  0x25   :  { %1049 = vmatmul.mubr.msk.f32.gmra.mrb[12].mxu0 %vm186_vm0, %v118_v30  ;;  %1171 = vmatprep.subr.bf16.mxu1 %v1170_v21  ;;  %v163_v30 = vmul.f32 %v1499_v5, %v1579_v63  ;;  %v178_v33 = vadd.f32 %v162_v27, %v139_v58 }
  0x26   :  { %1051 = vmatprep.mubr.msk.f32.mxu0 %vm186_vm0, %v119_v41 }
  0x27   :  { %v179_v34 = vadd.f32 %v163_v30, %v140_v28 }
  0x28   :  { %1173 = vmatpush3.bf16.msra.mxu1 %v1170_v21 }
  0x29   :  { %1052 = vmatmul.mubr.msk.f32.gmra.mrb[14].mxu0 %vm186_vm0, %v120_v12  ;;  %1175 = vmatprep.subr.bf16.mxu1 %v1174_v18 }
  0x2a   :  { %1118 = vmatprep.mubr.msk.f32.mxu0 %vm186_vm0, %v166_v47 }
  0x2c   :  { %1177 = vmatpush3.bf16.msra.mxu1 %v1174_v18 }
  0x2d   :  { %1119 = vmatmul.mubr.msk.f32.vlgmr.msra.gmra.mrb[16].mxu0 %vm186_vm0, %v167_v53  ;;  %1179 = vmatprep.subr.bf16.mxu1 %v1178_v35 }
  0x2e   :  { %1121 = vmatprep.mubr.msk.f32.mxu0 %vm186_vm0, %v168_v60 }
  0x30   :  { %1181 = vmatpush3.bf16.msra.mxu1 %v1178_v35 }
  0x31   :  { %1122 = vmatmul.mubr.msk.f32.gmra.mrb[18].mxu0 %vm186_vm0, %v169_v1  ;;  %1190 = vmatprep.subr.bf16.mxu1 %v1528_v29 }
  0x32   :  { %1124 = vmatprep.mubr.msk.f32.mxu0 %vm186_vm0, %v170_v4 }
  0x35   :  { %1125 = vmatmul.mubr.msk.f32.gmra.mrb[20].mxu0 %vm186_vm0, %v171_v6 }
  0x36   :  { %1127 = vmatprep.mubr.msk.f32.mxu0 %vm186_vm0, %v172_v7 }
  0x39   :  { %1128 = vmatmul.mubr.msk.f32.gmra.mrb[22].mxu0 %vm186_vm0, %v173_v37 }
  0x3a   :  { %1130 = vmatprep.mubr.msk.f32.mxu0 %vm186_vm0, %v174_v45  ;;  %v141_v45 = vmul.f32 %v1482_v62, %v1590_v2 }
  0x3d   :  { %1131 = vmatmul.mubr.msk.f32.gmra.mrb[24].mxu0 %vm186_vm0, %v175_v20  ;;  %v164_v20 = vmul.f32 %v1499_v5, %v1595_v3 }
  0x3e   :  { %1133 = vmatprep.mubr.msk.f32.mxu0 %vm186_vm0, %v176_v9 }
  0x41   :  { %1134 = vmatmul.mubr.msk.f32.gmra.mrb[26].mxu0 %vm186_vm0, %v177_v24  ;;  %v180_v24 = vadd.f32 %v164_v20, %v141_v45 }
  0x42   :  { %1136 = vmatprep.mubr.msk.f32.mxu0 %vm186_vm0, %v178_v33 }
  0x45   :  { %1137 = vmatmul.mubr.msk.f32.gmra.mrb[28].mxu0 %vm186_vm0, %v179_v34 }
  0xe0   :  { %v1032_v42 = vpop.f32.mrb[0].mxu0 }
  0xe1   :  { %v381_v43 = vmax.f32 %v1032_v42, 0.0  ;;  %v301_v39 = vpop.f32.mrb[1].mxu0 }
  0xe2   :  { %v380_v40 = vmax.f32 %v301_v39, 0.0 }
  0xe3   :  { %v397_v52 = vmul.f32 %v381_v43, %v381_v43 }
  0xe4   :  { %v1035_v41 = vpop.f32.mrb[2].mxu0  ;;  %v396_v13 = vmul.f32 %v380_v40, %v380_v40 }
  0xe5   :  { %v383_v59 = vmax.f32 %v1035_v41, 0.0  ;;  %v311_v14 = vpop.f32.mrb[3].mxu0 }
  0xe6   :  { %v382_v63 = vmax.f32 %v311_v14, 0.0  ;;  %1086 = vmatprep.mubr.f32.mxu1 %v396_v13 }
  0xe7   :  { %1087 = vmatmul.mubr.f32.vlgmr.msra.gmra.mrb[0].mxu1 %v397_v52  ;;  %v399_v21 = vmul.f32 %v383_v59, %v383_v59 }
  0xe8   :  { %v398_v11 = vmul.f32 %v382_v63, %v382_v63  ;;  %1192 = vmatpush3.bf16.msra.mxu1 %v1528_v29  ;;  %v1038_v12 = vpop.f32.mrb[4].mxu0 }
  0xe9   :  { %v385_v47 = vmax.f32 %v1038_v12, 0.0  ;;  %v321_v48 = vpop.f32.mrb[5].mxu0  ;;  %1191 = vmatprep.subr.bf16.mxu1 %v1538_v38 }
  0xea   :  { %v384_v49 = vmax.f32 %v321_v48, 0.0  ;;  %1089 = vmatprep.mubr.f32.mxu1 %v398_v11 }
  0xeb   :  { %1090 = vmatmul.mubr.f32.gmra.mrb[2].mxu1 %v399_v21  ;;  %v401_v53 = vmul.f32 %v385_v47, %v385_v47 }
  0xec   :  { %v400_v15 = vmul.f32 %v384_v49, %v384_v49  ;;  %v1041_v16 = vpop.f32.mrb[6].mxu0  ;;  %1193 = vmatpush3.bf16.msra.mxu1 %v1538_v38 }
  0xed   :  { %v387_v57 = vmax.f32 %v1041_v16, 0.0  ;;  %v331_v17 = vpop.f32.mrb[7].mxu0 }
  0xee   :  { %v386_v18 = vmax.f32 %v331_v17, 0.0  ;;  %1092 = vmatprep.mubr.f32.mxu1 %v400_v15 }
  0xef   :  { %1093 = vmatmul.mubr.f32.gmra.mrb[4].mxu1 %v401_v53  ;;  %v403_v61 = vmul.f32 %v387_v57, %v387_v57 }
  0xf0   :  { %v402_v29 = vmul.f32 %v386_v18, %v386_v18  ;;  %v1044_v60 = vpop.f32.mrb[8].mxu0 }
  0xf1   :  { %v389_v0 = vmax.f32 %v1044_v60, 0.0  ;;  %v341_v1 = vpop.f32.mrb[9].mxu0 }
  0xf2   :  { %v388_v19 = vmax.f32 %v341_v1, 0.0  ;;  %1095 = vmatprep.mubr.f32.mxu1 %v402_v29 }
  0xf3   :  { %1096 = vmatmul.mubr.f32.gmra.mrb[6].mxu1 %v403_v61  ;;  %v405_v23 = vmul.f32 %v389_v0, %v389_v0 }
  0xf4   :  { %v404_v22 = vmul.f32 %v388_v19, %v388_v19  ;;  %v1047_v4 = vpop.f32.mrb[10].mxu0 }
  0xf5   :  { %v391_v26 = vmax.f32 %v1047_v4, 0.0  ;;  %v351_v6 = vpop.f32.mrb[11].mxu0 }
  0xf6   :  { %v390_v38 = vmax.f32 %v351_v6, 0.0  ;;  %1098 = vmatprep.mubr.f32.mxu1 %v404_v22 }
  0xf7   :  { %1099 = vmatmul.mubr.f32.gmra.mrb[8].mxu1 %v405_v23  ;;  %v407_v7 = vmul.f32 %v391_v26, %v391_v26 }
  0xf8   :  { %v406_v31 = vmul.f32 %v390_v38, %v390_v38  ;;  %v1050_v32 = vpop.f32.mrb[12].mxu0 }
  0xf9   :  { %v393_v8 = vmax.f32 %v1050_v32, 0.0  ;;  %v361_v36 = vpop.f32.mrb[13].mxu0 }
  0xfa   :  { %v392_v37 = vmax.f32 %v361_v36, 0.0  ;;  %1101 = vmatprep.mubr.f32.mxu1 %v406_v31 }
  0xfb   :  { %1102 = vmatmul.mubr.f32.gmra.mrb[10].mxu1 %v407_v7  ;;  %v409_v50 = vmul.f32 %v393_v8, %v393_v8 }
  0xfc   :  { %v408_v10 = vmul.f32 %v392_v37, %v392_v37  ;;  %v1053_v44 = vpop.f32.mrb[14].mxu0 }
  0xfd   :  { %v395_v51 = vmax.f32 %v1053_v44, 0.0  ;;  %v371_v54 = vpop.f32.mrb[15].mxu0 }
  0xfe   :  { %v394_v55 = vmax.f32 %v371_v54, 0.0  ;;  %1104 = vmatprep.mubr.f32.mxu1 %v408_v10 }
  0xff   :  { %1105 = vmatmul.mubr.f32.gmra.mrb[12].mxu1 %v409_v50  ;;  %v411_v56 = vmul.f32 %v395_v51, %v395_v51 }
 0x100   :  { %v410_v9 = vmul.f32 %v394_v55, %v394_v55  ;;  %v1120_v25 = vpop.f32.mrb[16].mxu0 }
 0x101   :  { %v691_v58 = vpop.f32.mrb[17].mxu0  ;;  %v935_v39 = vmul.f32 -1.442695, %v1120_v25 }
 0x102   :  { %1107 = vmatprep.mubr.f32.mxu1 %v410_v9  ;;  %v934_v40 = vmul.f32 -1.442695, %v691_v58 }
 0x103   :  { %1108 = vmatmul.mubr.f32.gmra.mrb[14].mxu1 %v411_v56  ;;  %1194 = vpow2.f32 %v935_v39 }
 0x104   :  { %1139 = vmatprep.mubr.msk.f32.mxu1 %vm186_vm0, %v180_v24  ;;  %v1123_v27 = vpop.f32.mrb[18].mxu0  ;;  %1196 = vpow2.f32 %v934_v40 }
 0x105   :  { %v701_v62 = vpop.f32.mrb[19].mxu0  ;;  %v937_v41 = vmul.f32 -1.442695, %v1123_v27 }
 0x106   :  { %v936_v13 = vmul.f32 -1.442695, %v701_v62 }
 0x107   :  { %1140 = vmatmul.mubr.msk.f32.vlgmr.msra.gmra.mrb[16].mxu1 %vm186_vm0, %v1556_v46  ;;  %1198 = vpow2.f32 %v937_v41 }
 0x108   :  { %v1126_v5 = vpop.f32.mrb[20].mxu0  ;;  %1200 = vpow2.f32 %v936_v13 }
 0x109   :  { %v711_v2 = vpop.f32.mrb[21].mxu0  ;;  %v939_v52 = vmul.f32 -1.442695, %v1126_v5 }
 0x10a   :  { %v938_v46 = vmul.f32 -1.442695, %v711_v2 }
 0x10b   :  { %1202 = vpow2.f32 %v939_v52 }
 0x10c   :  { %v1129_v3 = vpop.f32.mrb[22].mxu0  ;;  %1204 = vpow2.f32 %v938_v46 }
 0x10d   :  { %v721_v35 = vpop.f32.mrb[23].mxu0  ;;  %v1195_v59 = vpop.eup %1194  ;;  %v941_v14 = vmul.f32 -1.442695, %v1129_v3 }
 0x10e   :  { %v940_v63 = vmul.f32 -1.442695, %v721_v35  ;;  %v1197_v11 = vpop.eup %1196  ;;  %v819_v12 = vadd.f32 1.0, %v1195_v59 }
 0x10f   :  { %1206 = vpow2.f32 %v941_v14  ;;  %v818_v49 = vadd.f32 1.0, %v1197_v11 }
 0x110   :  { %v1132_v28 = vpop.f32.mrb[24].mxu0  ;;  %1208 = vpow2.f32 %v940_v63 }
 0x111   :  { %v731_v30 = vpop.f32.mrb[25].mxu0  ;;  %v1199_v21 = vpop.eup %1198  ;;  %v943_v47 = vmul.f32 -1.442695, %v1132_v28  ;;  %1210 = vrcp.f32 %v819_v12 }
 0x112   :  { %v942_v48 = vmul.f32 -1.442695, %v731_v30  ;;  %v1201_v15 = vpop.eup %1200  ;;  %v821_v16 = vadd.f32 1.0, %v1199_v21 }
 0x113   :  { %1212 = vpow2.f32 %v943_v47  ;;  %v820_v18 = vadd.f32 1.0, %v1201_v15 }
 0x114   :  { %v1135_v33 = vpop.f32.mrb[26].mxu0  ;;  %1214 = vpow2.f32 %v942_v48 }
 0x115   :  { %v741_v34 = vpop.f32.mrb[27].mxu0  ;;  %v1203_v53 = vpop.eup %1202  ;;  %v945_v57 = vmul.f32 -1.442695, %v1135_v33  ;;  %1216 = vrcp.f32 %v818_v49 }
 0x116   :  { %v944_v17 = vmul.f32 -1.442695, %v741_v34  ;;  %v1205_v29 = vpop.eup %1204  ;;  %1218 = vrcp.f32 %v821_v16  ;;  %v823_v60 = vadd.f32 1.0, %v1203_v53 }
 0x117   :  { %1220 = vpow2.f32 %v945_v57  ;;  %v822_v19 = vadd.f32 1.0, %v1205_v29 }
 0x118   :  { %v1138_v42 = vpop.f32.mrb[28].mxu0  ;;  %1222 = vpow2.f32 %v944_v17 }
 0x119   :  { %v751_v43 = vpop.f32.mrb[29].mxu0  ;;  %v947_v61 = vmul.f32 -1.442695, %v1138_v42  ;;  %v1207_v1 = vpop.eup %1206  ;;  %1224 = vrcp.f32 %v820_v18 }
 0x11a   :  { %v946_v0 = vmul.f32 -1.442695, %v751_v43  ;;  %v1209_v22 = vpop.eup %1208  ;;  %1226 = vrcp.f32 %v823_v60  ;;  %v825_v23 = vadd.f32 1.0, %v1207_v1 }
 0x11b   :  { %1228 = vpow2.f32 %v947_v61  ;;  %v1211_v4 = vpop.eup %1210  ;;  %v824_v6 = vadd.f32 1.0, %v1209_v22 }
 0x11c   :  { %1230 = vpow2.f32 %v946_v0 }
 0x11d   :  { %v1213_v26 = vpop.eup %1212  ;;  %1232 = vrcp.f32 %v822_v19 }
 0x11e   :  { %v1215_v38 = vpop.eup %1214  ;;  %1234 = vrcp.f32 %v825_v23  ;;  %v827_v7 = vadd.f32 1.0, %v1213_v26 }
 0x11f   :  { %v1217_v31 = vpop.eup %1216  ;;  %1236 = vrcp.f32 %v824_v6  ;;  %v826_v37 = vadd.f32 1.0, %v1215_v38 }
 0x120   :  { %v1219_v32 = vpop.eup %1218  ;;  %1238 = vrcp.f32 %v827_v7 }
 0x121   :  { %v1221_v36 = vpop.eup %1220  ;;  %1240 = vrcp.f32 %v826_v37 }
 0x122   :  { %v1223_v45 = vpop.eup %1222  ;;  %v829_v54 = vadd.f32 1.0, %v1221_v36 }
 0x123   :  { %v1225_v50 = vpop.eup %1224  ;;  %v828_v24 = vadd.f32 1.0, %v1223_v45 }
 0x124   :  { %v1227_v51 = vpop.eup %1226  ;;  %1242 = vrcp.f32 %v829_v54 }
 0x125   :  { %v1229_v9 = vpop.eup %1228  ;;  %1244 = vrcp.f32 %v828_v24 }
 0x126   :  { %v1231_v58 = vpop.eup %1230  ;;  %v831_v5 = vadd.f32 1.0, %v1229_v9 }
 0x127   :  { %v1233_v62 = vpop.eup %1232  ;;  %v830_v3 = vadd.f32 1.0, %v1231_v58 }
 0x128   :  { %v1235_v30 = vpop.eup %1234  ;;  %1246 = vrcp.f32 %v831_v5 }
 0x129   :  { %v1237_v34 = vpop.eup %1236  ;;  %1248 = vrcp.f32 %v830_v3 }
 0x12a   :  { %v1239_v40 = vpop.eup %1238 }
 0x12b   :  { %v1241_v13 = vpop.eup %1240 }
 0x12e   :  { %v1243_v14 = vpop.eup %1242 }
 0x12f   :  { %v1245_v11 = vpop.eup %1244 }
 0x132   :  { %v1247_v48 = vpop.eup %1246 }
 0x133   :  { %v1249_v15 = vpop.eup %1248 }
 0x1ba   :  { %v1088_v8 = vpop.f32.mrb[0].mxu1 }
 0x1bb   :  { %v867_v10 = vmul.f32 %v1211_v4, %v1088_v8  ;;  %v494_v44 = vpop.f32.mrb[1].mxu1 }
 0x1bc   :  { %v866_v20 = vmul.f32 %v1217_v31, %v494_v44 }
 0x1bd   :  { %883 = vst.msk [vmem:[%s1792_s7 + $0x8] sm:$0xff] %vm186_vm0, %v867_v10 }
 0x1be   :  { %882 = vst.msk [vmem:[%s1792_s7] sm:$0xff] %vm186_vm0, %v866_v20  ;;  %v1091_v55 = vpop.f32.mrb[2].mxu1 }
 0x1bf   :  { %v869_v25 = vmul.f32 %v1219_v32, %v1091_v55  ;;  %v504_v56 = vpop.f32.mrb[3].mxu1 }
 0x1c0   :  { %v868_v27 = vmul.f32 %v1225_v50, %v504_v56 }
 0x1c1   :  { %885 = vst.msk [vmem:[%s1792_s7 + $0x18] sm:$0xff] %vm186_vm0, %v869_v25 }
 0x1c2   :  { %884 = vst.msk [vmem:[%s1792_s7 + $0x10] sm:$0xff] %vm186_vm0, %v868_v27  ;;  %v1094_v2 = vpop.f32.mrb[4].mxu1 }
 0x1c3   :  { %v871_v35 = vmul.f32 %v1227_v51, %v1094_v2  ;;  %v514_v28 = vpop.f32.mrb[5].mxu1 }
 0x1c4   :  { %v870_v33 = vmul.f32 %v1233_v62, %v514_v28 }
 0x1c5   :  { %887 = vst.msk [vmem:[%s1792_s7 + $0x28] sm:$0xff] %vm186_vm0, %v871_v35 }
 0x1c6   :  { %886 = vst.msk [vmem:[%s1792_s7 + $0x20] sm:$0xff] %vm186_vm0, %v870_v33  ;;  %v1097_v42 = vpop.f32.mrb[6].mxu1 }
 0x1c7   :  { %v873_v43 = vmul.f32 %v1235_v30, %v1097_v42  ;;  %v524_v39 = vpop.f32.mrb[7].mxu1 }
 0x1c8   :  { %v872_v41 = vmul.f32 %v1237_v34, %v524_v39 }
 0x1c9   :  { %889 = vst.msk [vmem:[%s1792_s7 + $0x38] sm:$0xff] %vm186_vm0, %v873_v43 }
 0x1ca   :  { %888 = vst.msk [vmem:[%s1792_s7 + $0x30] sm:$0xff] %vm186_vm0, %v872_v41  ;;  %v1100_v52 = vpop.f32.mrb[8].mxu1 }
 0x1cb   :  { %v875_v46 = vmul.f32 %v1239_v40, %v1100_v52  ;;  %v534_v59 = vpop.f32.mrb[9].mxu1 }
 0x1cc   :  { %v874_v63 = vmul.f32 %v1241_v13, %v534_v59 }
 0x1cd   :  { %891 = vst.msk [vmem:[%s1792_s7 + $0x48] sm:$0xff] %vm186_vm0, %v875_v46 }
 0x1ce   :  { %890 = vst.msk [vmem:[%s1792_s7 + $0x40] sm:$0xff] %vm186_vm0, %v874_v63  ;;  %v1103_v12 = vpop.f32.mrb[10].mxu1 }
 0x1cf   :  { %v877_v21 = vmul.f32 %v1243_v14, %v1103_v12  ;;  %v544_v47 = vpop.f32.mrb[11].mxu1 }
 0x1d0   :  { %v876_v49 = vmul.f32 %v1245_v11, %v544_v47 }
 0x1d1   :  { %893 = vst.msk [vmem:[%s1792_s7 + $0x58] sm:$0xff] %vm186_vm0, %v877_v21 }
 0x1d2   :  { %892 = vst.msk [vmem:[%s1792_s7 + $0x50] sm:$0xff] %vm186_vm0, %v876_v49  ;;  %v1106_v16 = vpop.f32.mrb[12].mxu1 }
 0x1d3   :  { %v879_v53 = vmul.f32 %v1247_v48, %v1106_v16  ;;  %v554_v57 = vpop.f32.mrb[13].mxu1 }
 0x1d4   :  { %v878_v17 = vmul.f32 %v1249_v15, %v554_v57 }
 0x1d5   :  { %895 = vst.msk [vmem:[%s1792_s7 + $0x68] sm:$0xff] %vm186_vm0, %v879_v53 }
 0x1d6   :  { %894 = vst.msk [vmem:[%s1792_s7 + $0x60] sm:$0xff] %vm186_vm0, %v878_v17  ;;  %v1109_v18 = vpop.f32.mrb[14].mxu1 }
 0x1d7   :  { %v564_v29 = vpop.f32.mrb[15].mxu1 }
 0x1da   :  { %v1141_v60 = vpop.f32.mrb[16].mxu1 }
 0x1db   :  { %v949_v61 = vmul.f32 -1.442695, %v1141_v60  ;;  %v761_v0 = vpop.f32.mrb[17].mxu1 }
 0x1dc   :  { %v948_v1 = vmul.f32 -1.442695, %v761_v0 }
 0x1dd   :  { %1250 = vpow2.f32 %v949_v61 }
 0x1de   :  { %1252 = vpow2.f32 %v948_v1 }
 0x1e7   :  { %v1251_v19 = vpop.eup %1250 }
 0x1e8   :  { %v1253_v22 = vpop.eup %1252  ;;  %v833_v4 = vadd.f32 1.0, %v1251_v19 }
 0x1e9   :  { %v832_v23 = vadd.f32 1.0, %v1253_v22 }
 0x1ea   :  { %1254 = vrcp.f32 %v833_v4 }
 0x1eb   :  { %1256 = vrcp.f32 %v832_v23 }
 0x1f4   :  { %v1255_v26 = vpop.eup %1254 }
 0x1f5   :  { %v1257_v6 = vpop.eup %1256  ;;  %v881_v38 = vmul.f32 %v1255_v26, %v1109_v18 }
 0x1f6   :  { %v880_v31 = vmul.f32 %v1257_v6, %v564_v29 }
 0x1f7   :  { %897 = vst.msk [vmem:[%s1792_s7 + $0x78] sm:$0xff] %vm186_vm0, %v881_v38 }
 0x1f8   :  { %896 = vst.msk [vmem:[%s1792_s7 + $0x70] sm:$0xff] %vm186_vm0, %v880_v31 }

</bundles_post_ra>
